<compile_context>
chip_gen: v6e
topology: v6e:2x2x1
jax: 0.10.0
libtpu: 0.0.40
codegen_flags: <defaults>
</compile_context>

<pallas_src>
import jax
import jax.numpy as jnp
from jax.experimental import pallas as pl
from jax.experimental.pallas import tpu as pltpu

C_IN = 4
C_OUT = 8
K = 3
PAD = 1
EPS = 1e-5           # PyTorch BatchNorm2d default
KKC = K * K * C_IN   # 36 taps per output pixel
W_TILE = 16          # output pixels per grid step -> W_TILE*C_OUT = 128 lanes (lane-dense)


def _stage_kernel(p_ref, w_ref, b_ref, o_ref):
    # p_ref: (1, M, W_TILE*KKC)          im2col patches for one W chunk, M = N*H rows
    # w_ref: (W_TILE*KKC, W_TILE*C_OUT)  block-diagonal BN-folded conv weight (576, 128), constant
    # b_ref: (1, W_TILE*C_OUT)           fused bias (conv bias + BN), tiled over the chunk (1, 128)
    # o_ref: (1, M, W_TILE*C_OUT)        lane-dense output block
    y = jnp.dot(p_ref[0], w_ref[...], preferred_element_type=jnp.float32)
    o_ref[0] = jnp.maximum(y + b_ref[...], 0.0).astype(o_ref.dtype)   # fused bias + ReLU


def fold_stage_params(w_oihw, conv_b, gamma, beta, run_mean, run_var):
    """One-time (per parameter set) folding -- hoisted out of the per-call forward."""
    scale = gamma / jnp.sqrt(run_var + EPS)                              # (C_OUT,)
    bias = (conv_b - run_mean) * scale + beta                            # (C_OUT,)
    w_flat = jnp.transpose(w_oihw, (2, 3, 1, 0)).reshape(KKC, C_OUT)     # (ky,kx,ci) tap order
    w_fused = (w_flat * scale[None, :]).astype(jnp.float32)              # (36, 8)
    # Block-diagonal weight for ONE W chunk (fixed size, independent of W):
    #   out[m, wt*C_OUT+co] = sum_t patches[m, wt*KKC+t] * w_fused[t, co]
    # (Optional v5e-only tweak: zero-pad KKC 36->40 so the lane axis is 5*128; skipped here.)
    w_bd = jnp.kron(jnp.eye(W_TILE, dtype=jnp.float32), w_fused)         # (576, 128)
    b_row = jnp.tile(bias.astype(jnp.float32), W_TILE).reshape(1, W_TILE * C_OUT)  # (1, 128)
    return w_bd, b_row


def _stage_call(nc, M, out_dtype, *, single_buffer_consts):
    pk = W_TILE * KKC    # 576
    po = W_TILE * C_OUT  # 128
    const_kwargs = {}
    if single_buffer_consts:
        # Weight/bias index_maps never change across the grid; single-buffer them so their VMEM
        # footprint stays 1x (matters as W grows: the weight tile is 288 KiB).
        const_kwargs = dict(pipeline_mode=pl.Buffered(buffer_count=1))
    flops = 2 * nc * M * pk * po + nc * M * po
    bytes_accessed = 4 * (nc * M * pk + pk * po + po + nc * M * po)
    return pl.pallas_call(
        _stage_kernel,
        out_shape=jax.ShapeDtypeStruct((nc, M, po), out_dtype),
        grid=(nc,),
        in_specs=[
            pl.BlockSpec((1, M, pk), lambda c: (c, 0, 0)),
            pl.BlockSpec((pk, po), lambda c: (0, 0), **const_kwargs),
            pl.BlockSpec((1, po), lambda c: (0, 0), **const_kwargs),
        ],
        out_specs=pl.BlockSpec((1, M, po), lambda c: (c, 0, 0)),
        compiler_params=pltpu.CompilerParams(
            dimension_semantics=("parallel",)),
        cost_estimate=pl.CostEstimate(
            flops=flops, transcendentals=0, bytes_accessed=bytes_accessed),
    )


def stage_forward_nhwc(x_nhwc, w_bd, b_row):
    """Fused Conv3x3(pad=1) -> BN(eval) -> ReLU.  NHWC in, NHWC out."""
    N, H, W, C = x_nhwc.shape
    assert C == C_IN
    assert W % W_TILE == 0, "pad W to a multiple of W_TILE"
    nc = W // W_TILE
    M = N * H                                    # batch folded into the matmul M dimension

    # Wrapper-side layout plumbing (XLA glue, not compute): zero-pad + im2col, (ky,kx,ci) order.
    xp = jnp.pad(x_nhwc.astype(jnp.float32), ((0, 0), (PAD, PAD), (PAD, PAD), (0, 0)))
    taps = [xp[:, ky:ky + H, kx:kx + W, :] for ky in range(K) for kx in range(K)]
    patches = jnp.stack(taps, axis=3)                          # (N, H, W, 9, C_IN)
    patches = patches.reshape(M, nc, W_TILE * KKC)             # (M, nc, 576)
    patches = jnp.transpose(patches, (1, 0, 2))                # (nc, M, 576) lane-dense per chunk

    try:
        out = _stage_call(nc, M, x_nhwc.dtype, single_buffer_consts=True)(patches, w_bd, b_row)
    except Exception:
        # Fallback if this jax build rejects pl.Buffered(1); semantics are identical.
        out = _stage_call(nc, M, x_nhwc.dtype, single_buffer_consts=False)(patches, w_bd, b_row)

    # (nc, M, 128) -> (N, H, W, C_OUT)
    return jnp.transpose(out, (1, 0, 2)).reshape(N, H, W, C_OUT)


def stage_forward(x_nchw, w_bd, b_row):
    """NCHW adapter for PyTorch layout parity.  Prefer chaining stages through
    stage_forward_nhwc to avoid the per-stage NCHW<->NHWC transposes."""
    y = stage_forward_nhwc(jnp.transpose(x_nchw, (0, 2, 3, 1)), w_bd, b_row)
    return jnp.transpose(y, (0, 3, 1, 2))


def _stage_ref(x_nchw, w_oihw, conv_b, gamma, beta, run_mean, run_var):
    y = jax.lax.conv_general_dilated(
        x_nchw, w_oihw, window_strides=(1, 1),
        padding=((PAD, PAD), (PAD, PAD)),
        dimension_numbers=("NCHW", "OIHW", "NCHW"))
    y = y + conv_b.reshape(1, -1, 1, 1)
    y = (y - run_mean.reshape(1, -1, 1, 1)) / jnp.sqrt(run_var.reshape(1, -1, 1, 1) + EPS)
    y = y * gamma.reshape(1, -1, 1, 1) + beta.reshape(1, -1, 1, 1)
    return jnp.maximum(y, 0.0)


if __name__ == "__main__":
    key = jax.random.PRNGKey(0)
    kx, kw, kb, kg, kbt, km, kv = jax.random.split(key, 7)

    N, H, W = 2, 16, 16
    x = jax.random.normal(kx, (N, C_IN, H, W), jnp.float32)

    # Deterministic synthetic parameters (shapes per Conv2d(4,8,3) + BatchNorm2d(8)).
    w_oihw = 0.1 * jax.random.normal(kw, (C_OUT, C_IN, K, K), jnp.float32)
    conv_b = 0.1 * jax.random.normal(kb, (C_OUT,), jnp.float32)
    gamma = 1.0 + 0.1 * jax.random.normal(kg, (C_OUT,), jnp.float32)
    beta = 0.1 * jax.random.normal(kbt, (C_OUT,), jnp.float32)
    run_mean = 0.1 * jax.random.normal(km, (C_OUT,), jnp.float32)
    run_var = jax.random.uniform(kv, (C_OUT,), jnp.float32, 0.5, 1.5)

    # One-time folding (BN fold, block-diagonal weight, fused bias row) -- hoisted out of forward.
    w_bd, b_row = jax.block_until_ready(
        fold_stage_params(w_oihw, conv_b, gamma, beta, run_mean, run_var))

    out = stage_forward(x, w_bd, b_row)
    out = jax.block_until_ready(out)

    ref = _stage_ref(x, w_oihw, conv_b, gamma, beta, run_mean, run_var)
    assert out.shape == (N, C_OUT, H, W)
    assert jnp.allclose(out, ref, atol=1e-4, rtol=1e-4)

    print("KERNEL_OK")
</pallas_src>

<mosaic_0001>
module attributes {stable_mosaic.version = 11 : i64} {
  func.func @_stage_kernel(%arg0: i32, %arg1: memref<1x32x576xf32, #tpu.memory_space<vmem>>, %arg2: memref<576x128xf32, #tpu.memory_space<vmem>>, %arg3: memref<1x128xf32, #tpu.memory_space<vmem>>, %arg4: memref<1x32x128xf32, #tpu.memory_space<vmem>>) attributes {dimension_semantics = [#tpu.dimension_semantics<parallel>], iteration_bounds = array<i64: 1>, scalar_prefetch = 0 : i64, scratch_operands = 0 : i64, tpu.core_type = #tpu.core_type<tc>, window_params = [{transform_indices = @transform_0, window_bounds = array<i64: 1, 32, 576>}, {pipeline_mode = #tpu.pipeline_mode<synchronous>, transform_indices = @transform_1, window_bounds = array<i64: 576, 128>}, {pipeline_mode = #tpu.pipeline_mode<synchronous>, transform_indices = @transform_2, window_bounds = array<i64: 1, 128>}, {transform_indices = @transform_3, window_bounds = array<i64: 1, 32, 128>}]} {
    %c0 = arith.constant 0 : index
    %c0_0 = arith.constant 0 : index
    %c0_1 = arith.constant 0 : index
    %0 = vector.load %arg1[%c0, %c0_0, %c0_1] : memref<1x32x576xf32, #tpu.memory_space<vmem>>, vector<1x32x576xf32>
    %1 = vector.shape_cast %0 : vector<1x32x576xf32> to vector<32x576xf32>
    %c0_2 = arith.constant 0 : index
    %c0_3 = arith.constant 0 : index
    %2 = vector.load %arg2[%c0_2, %c0_3] : memref<576x128xf32, #tpu.memory_space<vmem>>, vector<576x128xf32>
    %cst = arith.constant dense<0.000000e+00> : vector<32x128xf32>
    %3 = tpu.matmul %1, %2, %cst {dimension_numbers = #tpu.dot_dimension_numbers<[1], [0], [0], [1], [0, 0, 1, 1], [], []>} : vector<32x576xf32>, vector<576x128xf32>, vector<32x128xf32> -> vector<32x128xf32>
    %c0_4 = arith.constant 0 : index
    %c0_5 = arith.constant 0 : index
    %4 = vector.load %arg3[%c0_4, %c0_5] : memref<1x128xf32, #tpu.memory_space<vmem>>, vector<1x128xf32>
    %5 = vector.broadcast %4 : vector<1x128xf32> to vector<32x128xf32>
    %6 = arith.addf %3, %5 : vector<32x128xf32>
    %cst_6 = arith.constant 0.000000e+00 : f32
    %7 = vector.broadcast %cst_6 : f32 to vector<32x128xf32>
    %8 = arith.maximumf %6, %7 : vector<32x128xf32>
    %c0_7 = arith.constant 0 : index
    %c0_8 = arith.constant 0 : index
    %c0_9 = arith.constant 0 : index
    %9 = vector.load %arg4[%c0_7, %c0_8, %c0_9] : memref<1x32x128xf32, #tpu.memory_space<vmem>>, vector<1x32x128xf32>
    %10 = vector.shape_cast %9 : vector<1x32x128xf32> to vector<32x128xf32>
    %11 = vector.shape_cast %8 : vector<32x128xf32> to vector<1x32x128xf32>
    tpu.vector_store %arg4[%c0_7, %c0_8, %c0_9], %11 {strides = array<i32>} : memref<1x32x128xf32, #tpu.memory_space<vmem>>, vector<1x32x128xf32>,
    return
  }
  func.func @transform_0(%arg0: i32) -> (i32, i32, i32) {
    %c0_i32 = arith.constant 0 : i32
    %c0_i32_0 = arith.constant 0 : i32
    %c0_i32_1 = arith.constant 0 : i32
    return %arg0, %c0_i32, %c0_i32_0 : i32, i32, i32
  }
  func.func @transform_1(%arg0: i32) -> (i32, i32) {
    %c0_i32 = arith.constant 0 : i32
    %c0_i32_0 = arith.constant 0 : i32
    %c0_i32_1 = arith.constant 0 : i32
    return %c0_i32, %c0_i32_0 : i32, i32
  }
  func.func @transform_2(%arg0: i32) -> (i32, i32) {
    %c0_i32 = arith.constant 0 : i32
    %c0_i32_0 = arith.constant 0 : i32
    %c0_i32_1 = arith.constant 0 : i32
    return %c0_i32, %c0_i32_0 : i32, i32
  }
  func.func @transform_3(%arg0: i32) -> (i32, i32, i32) {
    %c0_i32 = arith.constant 0 : i32
    %c0_i32_0 = arith.constant 0 : i32
    %c0_i32_1 = arith.constant 0 : i32
    return %arg0, %c0_i32, %c0_i32_0 : i32, i32, i32
  }
}

module attributes {stable_mosaic.version = 11 : i64} {
  func.func @_stage_kernel(%arg0: i32, %arg1: memref<1x32x576xf32, #tpu.memory_space<vmem>>, %arg2: memref<576x128xf32, #tpu.memory_space<vmem>>, %arg3: memref<1x128xf32, #tpu.memory_space<vmem>>, %arg4: memref<1x32x128xf32, #tpu.memory_space<vmem>>) attributes {dimension_semantics = [#tpu.dimension_semantics<parallel>], iteration_bounds = array<i64: 1>, scalar_prefetch = 0 : i64, scratch_operands = 0 : i64, tpu.core_type = #tpu.core_type<tc>, window_params = [{transform_indices = @transform_0, window_bounds = array<i64: 1, 32, 576>}, {pipeline_mode = #tpu.pipeline_mode<synchronous>, transform_indices = @transform_1, window_bounds = array<i64: 576, 128>}, {pipeline_mode = #tpu.pipeline_mode<synchronous>, transform_indices = @transform_2, window_bounds = array<i64: 1, 128>}, {transform_indices = @transform_3, window_bounds = array<i64: 1, 32, 128>}]} {
    %c0 = arith.constant 0 : index
    %c0_0 = arith.constant 0 : index
    %c0_1 = arith.constant 0 : index
    %0 = vector.load %arg1[%c0, %c0_0, %c0_1] : memref<1x32x576xf32, #tpu.memory_space<vmem>>, vector<1x32x576xf32>
    %1 = vector.shape_cast %0 : vector<1x32x576xf32> to vector<32x576xf32>
    %c0_2 = arith.constant 0 : index
    %c0_3 = arith.constant 0 : index
    %2 = vector.load %arg2[%c0_2, %c0_3] : memref<576x128xf32, #tpu.memory_space<vmem>>, vector<576x128xf32>
    %cst = arith.constant dense<0.000000e+00> : vector<32x128xf32>
    %3 = tpu.matmul %1, %2, %cst {dimension_numbers = #tpu.dot_dimension_numbers<[1], [0], [0], [1], [0, 0, 1, 1], [], []>} : vector<32x576xf32>, vector<576x128xf32>, vector<32x128xf32> -> vector<32x128xf32>
    %c0_4 = arith.constant 0 : index
    %c0_5 = arith.constant 0 : index
    %4 = vector.load %arg3[%c0_4, %c0_5] : memref<1x128xf32, #tpu.memory_space<vmem>>, vector<1x128xf32>
    %5 = vector.broadcast %4 : vector<1x128xf32> to vector<32x128xf32>
    %6 = arith.addf %3, %5 : vector<32x128xf32>
    %cst_6 = arith.constant 0.000000e+00 : f32
    %7 = vector.broadcast %cst_6 : f32 to vector<32x128xf32>
    %8 = arith.maximumf %6, %7 : vector<32x128xf32>
    %c0_7 = arith.constant 0 : index
    %c0_8 = arith.constant 0 : index
    %c0_9 = arith.constant 0 : index
    %9 = vector.load %arg4[%c0_7, %c0_8, %c0_9] : memref<1x32x128xf32, #tpu.memory_space<vmem>>, vector<1x32x128xf32>
    %10 = vector.shape_cast %9 : vector<1x32x128xf32> to vector<32x128xf32>
    %11 = vector.shape_cast %8 : vector<32x128xf32> to vector<1x32x128xf32>
    tpu.vector_store %arg4[%c0_7, %c0_8, %c0_9], %11 {strides = array<i32>} : memref<1x32x128xf32, #tpu.memory_space<vmem>>, vector<1x32x128xf32>,
    return
  }
  func.func @transform_0(%arg0: i32) -> (i32, i32, i32) {
    %c0_i32 = arith.constant 0 : i32
    %c0_i32_0 = arith.constant 0 : i32
    %c0_i32_1 = arith.constant 0 : i32
    return %arg0, %c0_i32, %c0_i32_0 : i32, i32, i32
  }
  func.func @transform_1(%arg0: i32) -> (i32, i32) {
    %c0_i32 = arith.constant 0 : i32
    %c0_i32_0 = arith.constant 0 : i32
    %c0_i32_1 = arith.constant 0 : i32
    return %c0_i32, %c0_i32_0 : i32, i32
  }
  func.func @transform_2(%arg0: i32) -> (i32, i32) {
    %c0_i32 = arith.constant 0 : i32
    %c0_i32_0 = arith.constant 0 : i32
    %c0_i32_1 = arith.constant 0 : i32
    return %c0_i32, %c0_i32_0 : i32, i32
  }
  func.func @transform_3(%arg0: i32) -> (i32, i32, i32) {
    %c0_i32 = arith.constant 0 : i32
    %c0_i32_0 = arith.constant 0 : i32
    %c0_i32_1 = arith.constant 0 : i32
    return %arg0, %c0_i32, %c0_i32_0 : i32, i32, i32
  }
}

</mosaic_0001>

<bundles_post_ra>
// kernel: tpu_custom_call.1
= control target key start
LH: loop header
LB: loop body
LE: loop exit
PB: predicated region body
PF: predicated region fallthrough
CT: control target
= control target key end

     0   :  { %8 = vsyncpa [#allocation3], 0  ;;  %s697_s0 = inlined_call_operand.hbm [shape: f32[1,32,576], index: 0, kind: input, shape index: {}]   ;;  %s698_s1 = inlined_call_operand.hbm [shape: f32[576,128], index: 1, kind: input, shape index: {}]   ;;  %s699_s2 = inlined_call_operand.vmem [shape: f32[1,128], index: 2, kind: input, shape index: {}]   ;;  %s700_s3 = inlined_call_operand.hbm [shape: f32[1,32,128], index: 3, kind: output, shape index: {}]  }
   0x1   :  { %9 = vsyncpa [#allocation6], 0 }
   0x2   :  { %10 = vsyncpa [#allocation4], 0  ;;  %s652_s12 = smov [#allocation2]  }
   0x3   :  { %s16_s13 = sshll.u32 %s652_s12, 4  ;;  %s17_s13 = int_to_ptr.vmem [resolvable:$true] %s16_s13 }
   0x4   :  { %s594_s14 = scalar_lea.vmem %s17_s13, 2560  ;;  %p599_p1 = scmp.lt.s32.totalorder %s17_s13, %s17_s13 }
   0x5   :  { %p595_p0 = scmp.ne.s32.totalorder %s17_s13, %s594_s14  ;;  %p600_p2 = scmp.lt.s32.totalorder %s594_s14, %s594_s14 }
   0x7   :  { %p601_p3 = por %p600_p2, %p599_p1 }
   0x9   :  { %p602_p4 = pnand %p601_p3, %p595_p0 }
   0xb   :  { %605 = shalt.err (!%p602_p4)
}
   0xc   :  { %s653_s15 = smov 640   ;;  %s654_s16 = smov 40  }
   0xd   :  { %22 = dma.hbm_to_vmem [thread:$0]  %s697_s0, 2560, %s17_s13, [#allocation3], %s653_s15, %s653_s15, %s654_s16  }
   0xe   :  { %s655_s19 = smov [#allocation5]  }
   0xf   :  { %s28_s20 = sshll.u32 %s655_s19, 4  ;;  %s29_s20 = int_to_ptr.vmem [resolvable:$true] %s28_s20 }
  0x10   :  { %s614_s21 = scalar_lea.vmem %s29_s20, 9216  ;;  %p619_p6 = scmp.lt.s32.totalorder %s29_s20, %s29_s20 }
  0x11   :  { %p615_p5 = scmp.ne.s32.totalorder %s29_s20, %s614_s21  ;;  %p620_p7 = scmp.lt.s32.totalorder %s614_s21, %s614_s21 }
  0x13   :  { %p621_p8 = por %p620_p7, %p619_p6 }
  0x15   :  { %p622_p9 = pnand %p621_p8, %p615_p5 }
  0x17   :  { %625 = shalt.err (!%p622_p9)
}
  0x18   :  { %s656_s22 = smov 128   ;;  %s657_s23 = smov 8  }
  0x19   :  { %34 = dma.hbm_to_vmem [thread:$0]  %s698_s1, 9216, %s29_s20, [#allocation6], %s656_s22, %s656_s22, %s657_s23  }
  0x1a   :  { %646 = dma.done.wait [#allocation3], 2560  }
  0x1b   :  { %647 = vsyncadd [#allocation3], 4294964736 }
  0x1c   :  { %648 = dma.done.wait [#allocation6], 9216  }
  0x1d   :  { %649 = vsyncadd [#allocation6], 4294958080  ;;  %v94_v0 = vld [vmem:[#allocation5 + $0xf8] sm:$0xff]  ;;  %v93_v4 = vld [vmem:[#allocation5 + $0xf0] sm:$0xff]  ;;  %vm142_vm0 = vcmask 523264  }
  0x1e   :  { %v126_v1 = vld [vmem:[#allocation5 + $0x1f8] sm:$0xff]  ;;  %441 = vmatprep.subr.mxu0 %v94_v0  ;;  %v125_v5 = vld [vmem:[#allocation5 + $0x1f0] sm:$0xff]  ;;  %v92_v8 = vld [vmem:[#allocation5 + $0xe8] sm:$0xff] }
  0x1f   :  { %v78_v2 = vld [vmem:[#allocation5 + $0x78] sm:$0xff]  ;;  %485 = vmatprep.subr.mxu1 %v126_v1  ;;  %v77_v6 = vld [vmem:[#allocation5 + $0x70] sm:$0xff]  ;;  %v124_v9 = vld [vmem:[#allocation5 + $0x1e8] sm:$0xff] }
  0x20   :  { %v110_v3 = vld [vmem:[#allocation5 + $0x178] sm:$0xff]  ;;  %442 = vmatpush3.msra.mxu0 %v78_v2  ;;  %v109_v7 = vld [vmem:[#allocation5 + $0x170] sm:$0xff]  ;;  %v76_v10 = vld [vmem:[#allocation5 + $0x68] sm:$0xff] }
  0x21   :  { %486 = vmatpush3.msra.mxu1 %v110_v3  ;;  %443 = vmatprep.subr.mxu0 %v93_v4  ;;  %v108_v11 = vld [vmem:[#allocation5 + $0x168] sm:$0xff]  ;;  %v91_v12 = vld [vmem:[#allocation5 + $0xe0] sm:$0xff]  ;;  %v90_v16 = vld [vmem:[#allocation5 + $0xd8] sm:$0xff] }
  0x22   :  { %487 = vmatprep.subr.mxu1 %v125_v5  ;;  %444 = vmatpush3.msra.mxu0 %v77_v6  ;;  %v123_v13 = vld [vmem:[#allocation5 + $0x1e0] sm:$0xff]  ;;  %v122_v17 = vld [vmem:[#allocation5 + $0x1d8] sm:$0xff]  ;;  %v89_v20 = vld [vmem:[#allocation5 + $0xd0] sm:$0xff] }
  0x23   :  { %488 = vmatpush3.msra.mxu1 %v109_v7  ;;  %445 = vmatprep.subr.mxu0 %v92_v8  ;;  %v75_v14 = vld [vmem:[#allocation5 + $0x60] sm:$0xff]  ;;  %v74_v18 = vld [vmem:[#allocation5 + $0x58] sm:$0xff]  ;;  %v121_v21 = vld [vmem:[#allocation5 + $0x1d0] sm:$0xff] }
  0x24   :  { %489 = vmatprep.subr.mxu1 %v124_v9  ;;  %v107_v15 = vld [vmem:[#allocation5 + $0x160] sm:$0xff]  ;;  %446 = vmatpush3.msra.mxu0 %v76_v10  ;;  %v106_v19 = vld [vmem:[#allocation5 + $0x158] sm:$0xff]  ;;  %v73_v22 = vld [vmem:[#allocation5 + $0x50] sm:$0xff] }
  0x25   :  { %490 = vmatpush3.msra.mxu1 %v108_v11  ;;  %447 = vmatprep.subr.mxu0 %v91_v12  ;;  %v105_v23 = vld [vmem:[#allocation5 + $0x150] sm:$0xff]  ;;  %v88_v24 = vld [vmem:[#allocation5 + $0xc8] sm:$0xff]  ;;  %v87_v28 = vld [vmem:[#allocation5 + $0xc0] sm:$0xff] }
  0x26   :  { %491 = vmatprep.subr.mxu1 %v123_v13  ;;  %448 = vmatpush3.msra.mxu0 %v75_v14  ;;  %v120_v25 = vld [vmem:[#allocation5 + $0x1c8] sm:$0xff]  ;;  %v119_v29 = vld [vmem:[#allocation5 + $0x1c0] sm:$0xff]  ;;  %v86_v32 = vld [vmem:[#allocation5 + $0xb8] sm:$0xff] }
  0x27   :  { %492 = vmatpush3.msra.mxu1 %v107_v15  ;;  %449 = vmatprep.subr.mxu0 %v90_v16  ;;  %v72_v26 = vld [vmem:[#allocation5 + $0x48] sm:$0xff]  ;;  %v71_v30 = vld [vmem:[#allocation5 + $0x40] sm:$0xff]  ;;  %v118_v33 = vld [vmem:[#allocation5 + $0x1b8] sm:$0xff] }
  0x28   :  { %493 = vmatprep.subr.mxu1 %v122_v17  ;;  %450 = vmatpush3.msra.mxu0 %v74_v18  ;;  %v104_v27 = vld [vmem:[#allocation5 + $0x148] sm:$0xff]  ;;  %v103_v31 = vld [vmem:[#allocation5 + $0x140] sm:$0xff]  ;;  %v70_v34 = vld [vmem:[#allocation5 + $0x38] sm:$0xff] }
  0x29   :  { %494 = vmatpush3.msra.mxu1 %v106_v19  ;;  %451 = vmatprep.subr.mxu0 %v89_v20  ;;  %v102_v35 = vld [vmem:[#allocation5 + $0x138] sm:$0xff]  ;;  %v85_v36 = vld [vmem:[#allocation5 + $0xb0] sm:$0xff]  ;;  %v84_v40 = vld [vmem:[#allocation5 + $0xa8] sm:$0xff] }
  0x2a   :  { %495 = vmatprep.subr.mxu1 %v121_v21  ;;  %452 = vmatpush3.msra.mxu0 %v73_v22  ;;  %v117_v37 = vld [vmem:[#allocation5 + $0x1b0] sm:$0xff]  ;;  %v116_v41 = vld [vmem:[#allocation5 + $0x1a8] sm:$0xff]  ;;  %v83_v44 = vld [vmem:[#allocation5 + $0xa0] sm:$0xff] }
  0x2b   :  { %496 = vmatpush3.msra.mxu1 %v105_v23  ;;  %453 = vmatprep.subr.mxu0 %v88_v24  ;;  %v69_v38 = vld [vmem:[#allocation5 + $0x30] sm:$0xff]  ;;  %v68_v42 = vld [vmem:[#allocation5 + $0x28] sm:$0xff]  ;;  %v115_v45 = vld [vmem:[#allocation5 + $0x1a0] sm:$0xff] }
  0x2c   :  { %497 = vmatprep.subr.mxu1 %v120_v25  ;;  %454 = vmatpush3.msra.mxu0 %v72_v26  ;;  %v101_v39 = vld [vmem:[#allocation5 + $0x130] sm:$0xff]  ;;  %v100_v43 = vld [vmem:[#allocation5 + $0x128] sm:$0xff]  ;;  %v67_v46 = vld [vmem:[#allocation5 + $0x20] sm:$0xff] }
  0x2d   :  { %498 = vmatpush3.msra.mxu1 %v104_v27  ;;  %455 = vmatprep.subr.mxu0 %v87_v28  ;;  %v99_v47 = vld [vmem:[#allocation5 + $0x120] sm:$0xff]  ;;  %v82_v48 = vld [vmem:[#allocation5 + $0x98] sm:$0xff]  ;;  %v81_v52 = vld [vmem:[#allocation5 + $0x90] sm:$0xff] }
  0x2e   :  { %499 = vmatprep.subr.mxu1 %v119_v29  ;;  %456 = vmatpush3.msra.mxu0 %v71_v30  ;;  %v114_v49 = vld [vmem:[#allocation5 + $0x198] sm:$0xff]  ;;  %v113_v53 = vld [vmem:[#allocation5 + $0x190] sm:$0xff]  ;;  %v80_v56 = vld [vmem:[#allocation5 + $0x88] sm:$0xff] }
  0x2f   :  { %500 = vmatpush3.msra.mxu1 %v103_v31  ;;  %457 = vmatprep.subr.mxu0 %v86_v32  ;;  %v66_v50 = vld [vmem:[#allocation5 + $0x18] sm:$0xff]  ;;  %v65_v54 = vld [vmem:[#allocation5 + $0x10] sm:$0xff]  ;;  %v112_v57 = vld [vmem:[#allocation5 + $0x188] sm:$0xff] }
  0x30   :  { %501 = vmatprep.subr.mxu1 %v118_v33  ;;  %458 = vmatpush3.msra.mxu0 %v70_v34  ;;  %v98_v51 = vld [vmem:[#allocation5 + $0x118] sm:$0xff]  ;;  %v97_v55 = vld [vmem:[#allocation5 + $0x110] sm:$0xff]  ;;  %v64_v58 = vld [vmem:[#allocation5 + $0x8] sm:$0xff] }
  0x31   :  { %502 = vmatpush3.msra.mxu1 %v102_v35  ;;  %459 = vmatprep.subr.mxu0 %v85_v36  ;;  %v96_v59 = vld [vmem:[#allocation5 + $0x108] sm:$0xff]  ;;  %v79_v60 = vld [vmem:[#allocation5 + $0x80] sm:$0xff]  ;;  %v46_v1 = vld [vmem:[#allocation2 + $0x18] sm:$0xff] }
  0x32   :  { %503 = vmatprep.subr.mxu1 %v117_v37  ;;  %460 = vmatpush3.msra.mxu0 %v69_v38  ;;  %v111_v61 = vld [vmem:[#allocation5 + $0x180] sm:$0xff]  ;;  %v44_v63 = vld [vmem:[#allocation2 + $0x8] sm:$0xff]  ;;  %v45_v3 = vld [vmem:[#allocation2 + $0x10] sm:$0xff] }
  0x33   :  { %504 = vmatpush3.msra.mxu1 %v101_v39  ;;  %461 = vmatprep.subr.mxu0 %v84_v40  ;;  %v63_v62 = vld [vmem:[#allocation5] sm:$0xff]  ;;  %v134_v4 = vld [vmem:[#allocation5 + $0x238] sm:$0xff]  ;;  %v133_v5 = vld [vmem:[#allocation5 + $0x230] sm:$0xff] }
  0x34   :  { %505 = vmatprep.subr.mxu1 %v116_v41  ;;  %462 = vmatpush3.msra.mxu0 %v68_v42  ;;  %v95_v0 = vld [vmem:[#allocation5 + $0x100] sm:$0xff]  ;;  %v49_v6 = vld [vmem:[#allocation2 + $0x30] sm:$0xff]  ;;  %v48_v8 = vld [vmem:[#allocation2 + $0x28] sm:$0xff] }
  0x35   :  { %506 = vmatpush3.msra.mxu1 %v100_v43  ;;  %463 = vmatprep.subr.mxu0 %v83_v44  ;;  %v43_v2 = vld [vmem:[#allocation2] sm:$0xff]  ;;  %v50_v9 = vld [vmem:[#allocation2 + $0x38] sm:$0xff]  ;;  %v132_v10 = vld [vmem:[#allocation5 + $0x228] sm:$0xff] }
  0x36   :  { %507 = vmatprep.subr.mxu1 %v115_v45  ;;  %464 = vmatpush3.msra.mxu0 %v67_v46  ;;  %v51_v7 = vld [vmem:[#allocation2 + $0x40] sm:$0xff]  ;;  %v54_v12 = vld [vmem:[#allocation2 + $0x58] sm:$0xff]  ;;  %v56_v13 = vld [vmem:[#allocation2 + $0x68] sm:$0xff] }
  0x37   :  { %508 = vmatpush3.msra.mxu1 %v99_v47  ;;  %465 = vmatprep.subr.mxu0 %v82_v48  ;;  %v131_v11 = vld [vmem:[#allocation5 + $0x220] sm:$0xff]  ;;  %v53_v14 = vld [vmem:[#allocation2 + $0x50] sm:$0xff]  ;;  %v130_v16 = vld [vmem:[#allocation5 + $0x218] sm:$0xff] }
  0x38   :  { %509 = vmatprep.subr.mxu1 %v114_v49  ;;  %466 = vmatpush3.msra.mxu0 %v66_v50  ;;  %v55_v15 = vld [vmem:[#allocation2 + $0x60] sm:$0xff]  ;;  %v129_v17 = vld [vmem:[#allocation5 + $0x210] sm:$0xff]  ;;  %v58_v20 = vld [vmem:[#allocation2 + $0x78] sm:$0xff] }
  0x39   :  { %510 = vmatpush3.msra.mxu1 %v98_v51  ;;  %467 = vmatprep.subr.mxu0 %v81_v52  ;;  %v59_v18 = vld [vmem:[#allocation2 + $0x80] sm:$0xff]  ;;  %v61_v19 = vld [vmem:[#allocation2 + $0x90] sm:$0xff]  ;;  %v60_v21 = vld [vmem:[#allocation2 + $0x88] sm:$0xff] }
  0x3a   :  { %511 = vmatprep.subr.mxu1 %v113_v53  ;;  %468 = vmatpush3.msra.mxu0 %v65_v54  ;;  %v128_v22 = vld [vmem:[#allocation5 + $0x208] sm:$0xff]  ;;  %v127_v23 = vld [vmem:[#allocation5 + $0x200] sm:$0xff]  ;;  %v57_v25 = vld [vmem:[#allocation2 + $0x70] sm:$0xff] }
  0x3b   :  { %512 = vmatpush3.msra.mxu1 %v97_v55  ;;  %469 = vmatprep.subr.mxu0 %v80_v56  ;;  %v47_v24 = vld [vmem:[#allocation2 + $0x20] sm:$0xff]  ;;  %v52_v26 = vld [vmem:[#allocation2 + $0x48] sm:$0xff]  ;;  %v62_v27 = vld [vmem:[#allocation2 + $0x98] sm:$0xff] }
  0x3c   :  { %513 = vmatprep.subr.mxu1 %v112_v57  ;;  %470 = vmatpush3.msra.mxu0 %v64_v58  ;;  %v436_v43 = vld [vmem:[%s699_s2] ss:$0 sm:$0xff]  ;;  %s658_s2 = smov [#allocation7]  }
  0x3d   :  { %514 = vmatpush3.msra.mxu1 %v96_v59  ;;  %471 = vmatprep.subr.mxu0 %v79_v60  ;;  %s423_s26 = sshll.u32 %s658_s2, 4  ;;  %s424_s26 = int_to_ptr.vmem [resolvable:$true] %s423_s26 }
  0x3e   :  { %515 = vmatprep.subr.mxu1 %v111_v61  ;;  %472 = vmatpush3.msra.mxu0 %v63_v62  ;;  %s626_s27 = scalar_lea.vmem %s424_s26, 512  ;;  %p631_p11 = scmp.lt.s32.totalorder %s424_s26, %s424_s26 }
  0x3f   :  { %219 = vmatprep.mubr.f32.mxu0 %v44_v63  ;;  %516 = vmatpush3.msra.mxu1 %v95_v0  ;;  %p627_p10 = scmp.ne.s32.totalorder %s424_s26, %s626_s27  ;;  %p632_p12 = scmp.lt.s32.totalorder %s626_s27, %s626_s27 }
  0x40   :  { %304 = vmatprep.mubr.f32.mxu1 %v46_v1  ;;  %220 = vmatmul.mubr.f32.vlgmr.msra.gmra.mxu0 %v43_v2 }
  0x41   :  { %305 = vmatmul.mubr.f32.vlgmr.msra.gmra.mxu1 %v45_v3  ;;  %541 = vmatprep.subr.mxu0 %v134_v4  ;;  %p633_p13 = por %p632_p12, %p631_p11 }
  0x42   :  { %563 = vmatprep.subr.mxu1 %v134_v4  ;;  %542 = vmatpush3.msra.mxu0 %v134_v4 }
  0x43   :  { %571 = vmatpush3.msra.mxu1 %v134_v4  ;;  %543 = vmatprep.subr.mxu0 %v133_v5  ;;  %p634_p0 = pnand %p633_p13, %p627_p10 }
  0x44   :  { %564 = vmatprep.subr.mxu1 %v133_v5  ;;  %224 = vmatprep.mubr.f32.mxu0 %v49_v6 }
  0x45   :  { %309 = vmatprep.mubr.f32.mxu1 %v51_v7  ;;  %544 = vmatpush3.msra.mxu0 %v133_v5 }
  0x46   :  { %572 = vmatpush3.msra.mxu1 %v133_v5  ;;  %225 = vmatmul.mubr.f32.gmra.mxu0 %v48_v8 }
  0x47   :  { %310 = vmatmul.mubr.f32.gmra.mxu1 %v50_v9  ;;  %545 = vmatprep.subr.mxu0 %v132_v10 }
  0x48   :  { %565 = vmatprep.subr.mxu1 %v132_v10  ;;  %546 = vmatpush3.msra.mxu0 %v132_v10 }
  0x49   :  { %573 = vmatpush3.msra.mxu1 %v132_v10  ;;  %547 = vmatprep.subr.mxu0 %v131_v11 }
  0x4a   :  { %566 = vmatprep.subr.mxu1 %v131_v11  ;;  %229 = vmatprep.mubr.f32.mxu0 %v54_v12 }
  0x4b   :  { %314 = vmatprep.mubr.f32.mxu1 %v56_v13  ;;  %548 = vmatpush3.msra.mxu0 %v131_v11 }
  0x4c   :  { %574 = vmatpush3.msra.mxu1 %v131_v11  ;;  %230 = vmatmul.mubr.f32.gmra.mxu0 %v53_v14 }
  0x4d   :  { %315 = vmatmul.mubr.f32.gmra.mxu1 %v55_v15  ;;  %549 = vmatprep.subr.mxu0 %v130_v16 }
  0x4e   :  { %567 = vmatprep.subr.mxu1 %v130_v16  ;;  %550 = vmatpush3.msra.mxu0 %v130_v16 }
  0x4f   :  { %575 = vmatpush3.msra.mxu1 %v130_v16  ;;  %551 = vmatprep.subr.mxu0 %v129_v17 }
  0x50   :  { %568 = vmatprep.subr.mxu1 %v129_v17  ;;  %234 = vmatprep.mubr.f32.mxu0 %v59_v18 }
  0x51   :  { %319 = vmatprep.mubr.f32.mxu1 %v61_v19  ;;  %552 = vmatpush3.msra.mxu0 %v129_v17 }
  0x52   :  { %576 = vmatpush3.msra.mxu1 %v129_v17  ;;  %235 = vmatmul.mubr.f32.gmra.mxu0 %v58_v20 }
  0x53   :  { %320 = vmatmul.mubr.f32.gmra.mxu1 %v60_v21  ;;  %553 = vmatprep.subr.mxu0 %v128_v22 }
  0x54   :  { %569 = vmatprep.subr.mxu1 %v128_v22  ;;  %554 = vmatpush3.msra.mxu0 %v128_v22 }
  0x55   :  { %577 = vmatpush3.msra.mxu1 %v128_v22  ;;  %555 = vmatprep.subr.mxu0 %v127_v23 }
  0x56   :  { %570 = vmatprep.subr.mxu1 %v127_v23  ;;  %556 = vmatpush3.msra.mxu0 %v127_v23 }
  0x57   :  { %578 = vmatpush3.msra.mxu1 %v127_v23  ;;  %557 = vmatprep.mubr.msk.f32.mxu0 %vm142_vm0, %v47_v24 }
  0x58   :  { %560 = vmatprep.mubr.msk.f32.mxu1 %vm142_vm0, %v57_v25  ;;  %558 = vmatmul.mubr.msk.f32.vlgmr.msra.gmra.mxu0 %vm142_vm0, %v52_v26 }
  0x59   :  { %561 = vmatmul.mubr.msk.f32.vlgmr.msra.gmra.mxu1 %vm142_vm0, %v62_v27 }
 0x100   :  { %v473_v28 = vpop.f32.mrf.mxu0 }
 0x101   :  { %v517_v29 = vpop.f32.mrf.mxu1 }
 0x102   :  { %v474_v30 = vpop.f32.mrf.mxu0 }
 0x103   :  { %v518_v31 = vpop.f32.mrf.mxu1  ;;  %v475_v41 = vadd.f32 %v474_v30, %v473_v28 }
 0x104   :  { %v519_v53 = vadd.f32 %v518_v31, %v517_v29 }
 0x105   :  { %v222_v49 = vadd.f32 %v475_v41, %v436_v43 }
 0x106   :  { %v476_v32 = vpop.f32.mrf.mxu0 }
 0x107   :  { %v520_v33 = vpop.f32.mrf.mxu1  ;;  %v307_v62 = vadd.f32 %v519_v53, %v222_v49 }
 0x108   :  { %v477_v34 = vpop.f32.mrf.mxu0 }
 0x109   :  { %v521_v35 = vpop.f32.mrf.mxu1  ;;  %v478_v40 = vadd.f32 %v477_v34, %v476_v32 }
 0x10a   :  { %v522_v50 = vadd.f32 %v521_v35, %v520_v33 }
 0x10b   :  { %v227_v46 = vadd.f32 %v478_v40, %v436_v43 }
 0x10c   :  { %v479_v36 = vpop.f32.mrf.mxu0 }
 0x10d   :  { %v523_v37 = vpop.f32.mrf.mxu1  ;;  %v312_v57 = vadd.f32 %v522_v50, %v227_v46 }
 0x10e   :  { %v480_v38 = vpop.f32.mrf.mxu0 }
 0x10f   :  { %v524_v39 = vpop.f32.mrf.mxu1  ;;  %v481_v42 = vadd.f32 %v480_v38, %v479_v36 }
 0x110   :  { %v525_v54 = vadd.f32 %v524_v39, %v523_v37 }
 0x111   :  { %v232_v51 = vadd.f32 %v481_v42, %v436_v43 }
 0x112   :  { %v482_v44 = vpop.f32.mrf.mxu0 }
 0x113   :  { %v526_v45 = vpop.f32.mrf.mxu1  ;;  %v317_v63 = vadd.f32 %v525_v54, %v232_v51 }
 0x114   :  { %v483_v47 = vpop.f32.mrf.mxu0 }
 0x115   :  { %v527_v48 = vpop.f32.mrf.mxu1  ;;  %v484_v52 = vadd.f32 %v483_v47, %v482_v44 }
 0x116   :  { %v528_v56 = vadd.f32 %v527_v48, %v526_v45 }
 0x117   :  { %v237_v55 = vadd.f32 %v484_v52, %v436_v43 }
 0x118   :  { %v559_v58 = vpop.f32.mrf.mxu0 }
 0x119   :  { %v562_v59 = vpop.f32.mrf.mxu1  ;;  %v397_v60 = vadd.f32 %v559_v58, %v312_v57  ;;  %v322_v61 = vadd.f32 %v528_v56, %v237_v55 }
 0x11a   :  { %v391_v0 = vpop.f32.mrf.mxu0 }
 0x11b   :  { %v401_v1 = vpop.f32.mrf.mxu1  ;;  %v411_v2 = vmax.f32 %v397_v60, 0.0  ;;  %v407_v3 = vadd.f32 %v562_v59, %v322_v61  ;;  %v392_v4 = vadd.f32 %v391_v0, %v307_v62 }
 0x11c   :  { %v402_v5 = vadd.f32 %v401_v1, %v317_v63 }
 0x11d   :  { %415 = vst [vmem:[#allocation7 + $0x8] sm:$0xff] %v411_v2  ;;  %v413_v6 = vmax.f32 %v407_v3, 0.0  ;;  %v410_v7 = vmax.f32 %v392_v4, 0.0 }
 0x11e   :  { %v412_v8 = vmax.f32 %v402_v5, 0.0 }
 0x11f   :  { %417 = vst [vmem:[#allocation7 + $0x18] sm:$0xff] %v413_v6  ;;  %414 = vst [vmem:[#allocation7] sm:$0xff] %v410_v7 }
 0x120   :  { %416 = vst [vmem:[#allocation7 + $0x10] sm:$0xff] %v412_v8 }
 0x121   :  { %637 = shalt.err (!%p634_p0)
}
 0x122   :  { %429 = dma.vmem_to_hbm [thread:$0]  %s424_s26, 512, %s700_s3, [#allocation4], %s656_s22, %s656_s22, %s657_s23  }
 0x123   :  { %650 = dma.done.wait [#allocation4], 512  }
 0x124   :  { %651 = vsyncadd [#allocation4], 4294966784 }
 0x125   :  { %433 = vsyncpa [#allocation3], 1 }
 0x126   :  { %434 = vsyncpa [#allocation6], 1 }
 0x127   :  { %435 = vsyncpa [#allocation4], 1 }

// kernel: tpu_custom_call.1
= control target key start
LH: loop header
LB: loop body
LE: loop exit
PB: predicated region body
PF: predicated region fallthrough
CT: control target
= control target key end

     0   :  { %8 = vsyncpa [#allocation3], 0  ;;  %s697_s0 = inlined_call_operand.hbm [shape: f32[1,32,576], index: 0, kind: input, shape index: {}]   ;;  %s698_s1 = inlined_call_operand.hbm [shape: f32[576,128], index: 1, kind: input, shape index: {}]   ;;  %s699_s2 = inlined_call_operand.vmem [shape: f32[1,128], index: 2, kind: input, shape index: {}]   ;;  %s700_s3 = inlined_call_operand.hbm [shape: f32[1,32,128], index: 3, kind: output, shape index: {}]  }
   0x1   :  { %9 = vsyncpa [#allocation6], 0 }
   0x2   :  { %10 = vsyncpa [#allocation4], 0  ;;  %s652_s12 = smov [#allocation2]  }
   0x3   :  { %s16_s13 = sshll.u32 %s652_s12, 4  ;;  %s17_s13 = int_to_ptr.vmem [resolvable:$true] %s16_s13 }
   0x4   :  { %s594_s14 = scalar_lea.vmem %s17_s13, 2560  ;;  %p599_p1 = scmp.lt.s32.totalorder %s17_s13, %s17_s13 }
   0x5   :  { %p595_p0 = scmp.ne.s32.totalorder %s17_s13, %s594_s14  ;;  %p600_p2 = scmp.lt.s32.totalorder %s594_s14, %s594_s14 }
   0x7   :  { %p601_p3 = por %p600_p2, %p599_p1 }
   0x9   :  { %p602_p4 = pnand %p601_p3, %p595_p0 }
   0xb   :  { %605 = shalt.err (!%p602_p4)
}
   0xc   :  { %s653_s15 = smov 640   ;;  %s654_s16 = smov 40  }
   0xd   :  { %22 = dma.hbm_to_vmem [thread:$0]  %s697_s0, 2560, %s17_s13, [#allocation3], %s653_s15, %s653_s15, %s654_s16  }
   0xe   :  { %s655_s19 = smov [#allocation5]  }
   0xf   :  { %s28_s20 = sshll.u32 %s655_s19, 4  ;;  %s29_s20 = int_to_ptr.vmem [resolvable:$true] %s28_s20 }
  0x10   :  { %s614_s21 = scalar_lea.vmem %s29_s20, 9216  ;;  %p619_p6 = scmp.lt.s32.totalorder %s29_s20, %s29_s20 }
  0x11   :  { %p615_p5 = scmp.ne.s32.totalorder %s29_s20, %s614_s21  ;;  %p620_p7 = scmp.lt.s32.totalorder %s614_s21, %s614_s21 }
  0x13   :  { %p621_p8 = por %p620_p7, %p619_p6 }
  0x15   :  { %p622_p9 = pnand %p621_p8, %p615_p5 }
  0x17   :  { %625 = shalt.err (!%p622_p9)
}
  0x18   :  { %s656_s22 = smov 128   ;;  %s657_s23 = smov 8  }
  0x19   :  { %34 = dma.hbm_to_vmem [thread:$0]  %s698_s1, 9216, %s29_s20, [#allocation6], %s656_s22, %s656_s22, %s657_s23  }
  0x1a   :  { %646 = dma.done.wait [#allocation3], 2560  }
  0x1b   :  { %647 = vsyncadd [#allocation3], 4294964736 }
  0x1c   :  { %648 = dma.done.wait [#allocation6], 9216  }
  0x1d   :  { %649 = vsyncadd [#allocation6], 4294958080  ;;  %v94_v0 = vld [vmem:[#allocation5 + $0xf8] sm:$0xff]  ;;  %v93_v4 = vld [vmem:[#allocation5 + $0xf0] sm:$0xff]  ;;  %vm142_vm0 = vcmask 523264  }
  0x1e   :  { %v126_v1 = vld [vmem:[#allocation5 + $0x1f8] sm:$0xff]  ;;  %441 = vmatprep.subr.mxu0 %v94_v0  ;;  %v125_v5 = vld [vmem:[#allocation5 + $0x1f0] sm:$0xff]  ;;  %v92_v8 = vld [vmem:[#allocation5 + $0xe8] sm:$0xff] }
  0x1f   :  { %v78_v2 = vld [vmem:[#allocation5 + $0x78] sm:$0xff]  ;;  %485 = vmatprep.subr.mxu1 %v126_v1  ;;  %v77_v6 = vld [vmem:[#allocation5 + $0x70] sm:$0xff]  ;;  %v124_v9 = vld [vmem:[#allocation5 + $0x1e8] sm:$0xff] }
  0x20   :  { %v110_v3 = vld [vmem:[#allocation5 + $0x178] sm:$0xff]  ;;  %442 = vmatpush3.msra.mxu0 %v78_v2  ;;  %v109_v7 = vld [vmem:[#allocation5 + $0x170] sm:$0xff]  ;;  %v76_v10 = vld [vmem:[#allocation5 + $0x68] sm:$0xff] }
  0x21   :  { %486 = vmatpush3.msra.mxu1 %v110_v3  ;;  %443 = vmatprep.subr.mxu0 %v93_v4  ;;  %v108_v11 = vld [vmem:[#allocation5 + $0x168] sm:$0xff]  ;;  %v91_v12 = vld [vmem:[#allocation5 + $0xe0] sm:$0xff]  ;;  %v90_v16 = vld [vmem:[#allocation5 + $0xd8] sm:$0xff] }
  0x22   :  { %487 = vmatprep.subr.mxu1 %v125_v5  ;;  %444 = vmatpush3.msra.mxu0 %v77_v6  ;;  %v123_v13 = vld [vmem:[#allocation5 + $0x1e0] sm:$0xff]  ;;  %v122_v17 = vld [vmem:[#allocation5 + $0x1d8] sm:$0xff]  ;;  %v89_v20 = vld [vmem:[#allocation5 + $0xd0] sm:$0xff] }
  0x23   :  { %488 = vmatpush3.msra.mxu1 %v109_v7  ;;  %445 = vmatprep.subr.mxu0 %v92_v8  ;;  %v75_v14 = vld [vmem:[#allocation5 + $0x60] sm:$0xff]  ;;  %v74_v18 = vld [vmem:[#allocation5 + $0x58] sm:$0xff]  ;;  %v121_v21 = vld [vmem:[#allocation5 + $0x1d0] sm:$0xff] }
  0x24   :  { %489 = vmatprep.subr.mxu1 %v124_v9  ;;  %v107_v15 = vld [vmem:[#allocation5 + $0x160] sm:$0xff]  ;;  %446 = vmatpush3.msra.mxu0 %v76_v10  ;;  %v106_v19 = vld [vmem:[#allocation5 + $0x158] sm:$0xff]  ;;  %v73_v22 = vld [vmem:[#allocation5 + $0x50] sm:$0xff] }
  0x25   :  { %490 = vmatpush3.msra.mxu1 %v108_v11  ;;  %447 = vmatprep.subr.mxu0 %v91_v12  ;;  %v105_v23 = vld [vmem:[#allocation5 + $0x150] sm:$0xff]  ;;  %v88_v24 = vld [vmem:[#allocation5 + $0xc8] sm:$0xff]  ;;  %v87_v28 = vld [vmem:[#allocation5 + $0xc0] sm:$0xff] }
  0x26   :  { %491 = vmatprep.subr.mxu1 %v123_v13  ;;  %448 = vmatpush3.msra.mxu0 %v75_v14  ;;  %v120_v25 = vld [vmem:[#allocation5 + $0x1c8] sm:$0xff]  ;;  %v119_v29 = vld [vmem:[#allocation5 + $0x1c0] sm:$0xff]  ;;  %v86_v32 = vld [vmem:[#allocation5 + $0xb8] sm:$0xff] }
  0x27   :  { %492 = vmatpush3.msra.mxu1 %v107_v15  ;;  %449 = vmatprep.subr.mxu0 %v90_v16  ;;  %v72_v26 = vld [vmem:[#allocation5 + $0x48] sm:$0xff]  ;;  %v71_v30 = vld [vmem:[#allocation5 + $0x40] sm:$0xff]  ;;  %v118_v33 = vld [vmem:[#allocation5 + $0x1b8] sm:$0xff] }
  0x28   :  { %493 = vmatprep.subr.mxu1 %v122_v17  ;;  %450 = vmatpush3.msra.mxu0 %v74_v18  ;;  %v104_v27 = vld [vmem:[#allocation5 + $0x148] sm:$0xff]  ;;  %v103_v31 = vld [vmem:[#allocation5 + $0x140] sm:$0xff]  ;;  %v70_v34 = vld [vmem:[#allocation5 + $0x38] sm:$0xff] }
  0x29   :  { %494 = vmatpush3.msra.mxu1 %v106_v19  ;;  %451 = vmatprep.subr.mxu0 %v89_v20  ;;  %v102_v35 = vld [vmem:[#allocation5 + $0x138] sm:$0xff]  ;;  %v85_v36 = vld [vmem:[#allocation5 + $0xb0] sm:$0xff]  ;;  %v84_v40 = vld [vmem:[#allocation5 + $0xa8] sm:$0xff] }
  0x2a   :  { %495 = vmatprep.subr.mxu1 %v121_v21  ;;  %452 = vmatpush3.msra.mxu0 %v73_v22  ;;  %v117_v37 = vld [vmem:[#allocation5 + $0x1b0] sm:$0xff]  ;;  %v116_v41 = vld [vmem:[#allocation5 + $0x1a8] sm:$0xff]  ;;  %v83_v44 = vld [vmem:[#allocation5 + $0xa0] sm:$0xff] }
  0x2b   :  { %496 = vmatpush3.msra.mxu1 %v105_v23  ;;  %453 = vmatprep.subr.mxu0 %v88_v24  ;;  %v69_v38 = vld [vmem:[#allocation5 + $0x30] sm:$0xff]  ;;  %v68_v42 = vld [vmem:[#allocation5 + $0x28] sm:$0xff]  ;;  %v115_v45 = vld [vmem:[#allocation5 + $0x1a0] sm:$0xff] }
  0x2c   :  { %497 = vmatprep.subr.mxu1 %v120_v25  ;;  %454 = vmatpush3.msra.mxu0 %v72_v26  ;;  %v101_v39 = vld [vmem:[#allocation5 + $0x130] sm:$0xff]  ;;  %v100_v43 = vld [vmem:[#allocation5 + $0x128] sm:$0xff]  ;;  %v67_v46 = vld [vmem:[#allocation5 + $0x20] sm:$0xff] }
  0x2d   :  { %498 = vmatpush3.msra.mxu1 %v104_v27  ;;  %455 = vmatprep.subr.mxu0 %v87_v28  ;;  %v99_v47 = vld [vmem:[#allocation5 + $0x120] sm:$0xff]  ;;  %v82_v48 = vld [vmem:[#allocation5 + $0x98] sm:$0xff]  ;;  %v81_v52 = vld [vmem:[#allocation5 + $0x90] sm:$0xff] }
  0x2e   :  { %499 = vmatprep.subr.mxu1 %v119_v29  ;;  %456 = vmatpush3.msra.mxu0 %v71_v30  ;;  %v114_v49 = vld [vmem:[#allocation5 + $0x198] sm:$0xff]  ;;  %v113_v53 = vld [vmem:[#allocation5 + $0x190] sm:$0xff]  ;;  %v80_v56 = vld [vmem:[#allocation5 + $0x88] sm:$0xff] }
  0x2f   :  { %500 = vmatpush3.msra.mxu1 %v103_v31  ;;  %457 = vmatprep.subr.mxu0 %v86_v32  ;;  %v66_v50 = vld [vmem:[#allocation5 + $0x18] sm:$0xff]  ;;  %v65_v54 = vld [vmem:[#allocation5 + $0x10] sm:$0xff]  ;;  %v112_v57 = vld [vmem:[#allocation5 + $0x188] sm:$0xff] }
  0x30   :  { %501 = vmatprep.subr.mxu1 %v118_v33  ;;  %458 = vmatpush3.msra.mxu0 %v70_v34  ;;  %v98_v51 = vld [vmem:[#allocation5 + $0x118] sm:$0xff]  ;;  %v97_v55 = vld [vmem:[#allocation5 + $0x110] sm:$0xff]  ;;  %v64_v58 = vld [vmem:[#allocation5 + $0x8] sm:$0xff] }
  0x31   :  { %502 = vmatpush3.msra.mxu1 %v102_v35  ;;  %459 = vmatprep.subr.mxu0 %v85_v36  ;;  %v96_v59 = vld [vmem:[#allocation5 + $0x108] sm:$0xff]  ;;  %v79_v60 = vld [vmem:[#allocation5 + $0x80] sm:$0xff]  ;;  %v46_v1 = vld [vmem:[#allocation2 + $0x18] sm:$0xff] }
  0x32   :  { %503 = vmatprep.subr.mxu1 %v117_v37  ;;  %460 = vmatpush3.msra.mxu0 %v69_v38  ;;  %v111_v61 = vld [vmem:[#allocation5 + $0x180] sm:$0xff]  ;;  %v44_v63 = vld [vmem:[#allocation2 + $0x8] sm:$0xff]  ;;  %v45_v3 = vld [vmem:[#allocation2 + $0x10] sm:$0xff] }
  0x33   :  { %504 = vmatpush3.msra.mxu1 %v101_v39  ;;  %461 = vmatprep.subr.mxu0 %v84_v40  ;;  %v63_v62 = vld [vmem:[#allocation5] sm:$0xff]  ;;  %v134_v4 = vld [vmem:[#allocation5 + $0x238] sm:$0xff]  ;;  %v133_v5 = vld [vmem:[#allocation5 + $0x230] sm:$0xff] }
  0x34   :  { %505 = vmatprep.subr.mxu1 %v116_v41  ;;  %462 = vmatpush3.msra.mxu0 %v68_v42  ;;  %v95_v0 = vld [vmem:[#allocation5 + $0x100] sm:$0xff]  ;;  %v49_v6 = vld [vmem:[#allocation2 + $0x30] sm:$0xff]  ;;  %v48_v8 = vld [vmem:[#allocation2 + $0x28] sm:$0xff] }
  0x35   :  { %506 = vmatpush3.msra.mxu1 %v100_v43  ;;  %463 = vmatprep.subr.mxu0 %v83_v44  ;;  %v43_v2 = vld [vmem:[#allocation2] sm:$0xff]  ;;  %v50_v9 = vld [vmem:[#allocation2 + $0x38] sm:$0xff]  ;;  %v132_v10 = vld [vmem:[#allocation5 + $0x228] sm:$0xff] }
  0x36   :  { %507 = vmatprep.subr.mxu1 %v115_v45  ;;  %464 = vmatpush3.msra.mxu0 %v67_v46  ;;  %v51_v7 = vld [vmem:[#allocation2 + $0x40] sm:$0xff]  ;;  %v54_v12 = vld [vmem:[#allocation2 + $0x58] sm:$0xff]  ;;  %v56_v13 = vld [vmem:[#allocation2 + $0x68] sm:$0xff] }
  0x37   :  { %508 = vmatpush3.msra.mxu1 %v99_v47  ;;  %465 = vmatprep.subr.mxu0 %v82_v48  ;;  %v131_v11 = vld [vmem:[#allocation5 + $0x220] sm:$0xff]  ;;  %v53_v14 = vld [vmem:[#allocation2 + $0x50] sm:$0xff]  ;;  %v130_v16 = vld [vmem:[#allocation5 + $0x218] sm:$0xff] }
  0x38   :  { %509 = vmatprep.subr.mxu1 %v114_v49  ;;  %466 = vmatpush3.msra.mxu0 %v66_v50  ;;  %v55_v15 = vld [vmem:[#allocation2 + $0x60] sm:$0xff]  ;;  %v129_v17 = vld [vmem:[#allocation5 + $0x210] sm:$0xff]  ;;  %v58_v20 = vld [vmem:[#allocation2 + $0x78] sm:$0xff] }
  0x39   :  { %510 = vmatpush3.msra.mxu1 %v98_v51  ;;  %467 = vmatprep.subr.mxu0 %v81_v52  ;;  %v59_v18 = vld [vmem:[#allocation2 + $0x80] sm:$0xff]  ;;  %v61_v19 = vld [vmem:[#allocation2 + $0x90] sm:$0xff]  ;;  %v60_v21 = vld [vmem:[#allocation2 + $0x88] sm:$0xff] }
  0x3a   :  { %511 = vmatprep.subr.mxu1 %v113_v53  ;;  %468 = vmatpush3.msra.mxu0 %v65_v54  ;;  %v128_v22 = vld [vmem:[#allocation5 + $0x208] sm:$0xff]  ;;  %v127_v23 = vld [vmem:[#allocation5 + $0x200] sm:$0xff]  ;;  %v57_v25 = vld [vmem:[#allocation2 + $0x70] sm:$0xff] }
  0x3b   :  { %512 = vmatpush3.msra.mxu1 %v97_v55  ;;  %469 = vmatprep.subr.mxu0 %v80_v56  ;;  %v47_v24 = vld [vmem:[#allocation2 + $0x20] sm:$0xff]  ;;  %v52_v26 = vld [vmem:[#allocation2 + $0x48] sm:$0xff]  ;;  %v62_v27 = vld [vmem:[#allocation2 + $0x98] sm:$0xff] }
  0x3c   :  { %513 = vmatprep.subr.mxu1 %v112_v57  ;;  %470 = vmatpush3.msra.mxu0 %v64_v58  ;;  %v436_v43 = vld [vmem:[%s699_s2] ss:$0 sm:$0xff]  ;;  %s658_s2 = smov [#allocation7]  }
  0x3d   :  { %514 = vmatpush3.msra.mxu1 %v96_v59  ;;  %471 = vmatprep.subr.mxu0 %v79_v60  ;;  %s423_s26 = sshll.u32 %s658_s2, 4  ;;  %s424_s26 = int_to_ptr.vmem [resolvable:$true] %s423_s26 }
  0x3e   :  { %515 = vmatprep.subr.mxu1 %v111_v61  ;;  %472 = vmatpush3.msra.mxu0 %v63_v62  ;;  %s626_s27 = scalar_lea.vmem %s424_s26, 512  ;;  %p631_p11 = scmp.lt.s32.totalorder %s424_s26, %s424_s26 }
  0x3f   :  { %219 = vmatprep.mubr.f32.mxu0 %v44_v63  ;;  %516 = vmatpush3.msra.mxu1 %v95_v0  ;;  %p627_p10 = scmp.ne.s32.totalorder %s424_s26, %s626_s27  ;;  %p632_p12 = scmp.lt.s32.totalorder %s626_s27, %s626_s27 }
  0x40   :  { %304 = vmatprep.mubr.f32.mxu1 %v46_v1  ;;  %220 = vmatmul.mubr.f32.vlgmr.msra.gmra.mxu0 %v43_v2 }
  0x41   :  { %305 = vmatmul.mubr.f32.vlgmr.msra.gmra.mxu1 %v45_v3  ;;  %541 = vmatprep.subr.mxu0 %v134_v4  ;;  %p633_p13 = por %p632_p12, %p631_p11 }
  0x42   :  { %563 = vmatprep.subr.mxu1 %v134_v4  ;;  %542 = vmatpush3.msra.mxu0 %v134_v4 }
  0x43   :  { %571 = vmatpush3.msra.mxu1 %v134_v4  ;;  %543 = vmatprep.subr.mxu0 %v133_v5  ;;  %p634_p0 = pnand %p633_p13, %p627_p10 }
  0x44   :  { %564 = vmatprep.subr.mxu1 %v133_v5  ;;  %224 = vmatprep.mubr.f32.mxu0 %v49_v6 }
  0x45   :  { %309 = vmatprep.mubr.f32.mxu1 %v51_v7  ;;  %544 = vmatpush3.msra.mxu0 %v133_v5 }
  0x46   :  { %572 = vmatpush3.msra.mxu1 %v133_v5  ;;  %225 = vmatmul.mubr.f32.gmra.mxu0 %v48_v8 }
  0x47   :  { %310 = vmatmul.mubr.f32.gmra.mxu1 %v50_v9  ;;  %545 = vmatprep.subr.mxu0 %v132_v10 }
  0x48   :  { %565 = vmatprep.subr.mxu1 %v132_v10  ;;  %546 = vmatpush3.msra.mxu0 %v132_v10 }
  0x49   :  { %573 = vmatpush3.msra.mxu1 %v132_v10  ;;  %547 = vmatprep.subr.mxu0 %v131_v11 }
  0x4a   :  { %566 = vmatprep.subr.mxu1 %v131_v11  ;;  %229 = vmatprep.mubr.f32.mxu0 %v54_v12 }
  0x4b   :  { %314 = vmatprep.mubr.f32.mxu1 %v56_v13  ;;  %548 = vmatpush3.msra.mxu0 %v131_v11 }
  0x4c   :  { %574 = vmatpush3.msra.mxu1 %v131_v11  ;;  %230 = vmatmul.mubr.f32.gmra.mxu0 %v53_v14 }
  0x4d   :  { %315 = vmatmul.mubr.f32.gmra.mxu1 %v55_v15  ;;  %549 = vmatprep.subr.mxu0 %v130_v16 }
  0x4e   :  { %567 = vmatprep.subr.mxu1 %v130_v16  ;;  %550 = vmatpush3.msra.mxu0 %v130_v16 }
  0x4f   :  { %575 = vmatpush3.msra.mxu1 %v130_v16  ;;  %551 = vmatprep.subr.mxu0 %v129_v17 }
  0x50   :  { %568 = vmatprep.subr.mxu1 %v129_v17  ;;  %234 = vmatprep.mubr.f32.mxu0 %v59_v18 }
  0x51   :  { %319 = vmatprep.mubr.f32.mxu1 %v61_v19  ;;  %552 = vmatpush3.msra.mxu0 %v129_v17 }
  0x52   :  { %576 = vmatpush3.msra.mxu1 %v129_v17  ;;  %235 = vmatmul.mubr.f32.gmra.mxu0 %v58_v20 }
  0x53   :  { %320 = vmatmul.mubr.f32.gmra.mxu1 %v60_v21  ;;  %553 = vmatprep.subr.mxu0 %v128_v22 }
  0x54   :  { %569 = vmatprep.subr.mxu1 %v128_v22  ;;  %554 = vmatpush3.msra.mxu0 %v128_v22 }
  0x55   :  { %577 = vmatpush3.msra.mxu1 %v128_v22  ;;  %555 = vmatprep.subr.mxu0 %v127_v23 }
  0x56   :  { %570 = vmatprep.subr.mxu1 %v127_v23  ;;  %556 = vmatpush3.msra.mxu0 %v127_v23 }
  0x57   :  { %578 = vmatpush3.msra.mxu1 %v127_v23  ;;  %557 = vmatprep.mubr.msk.f32.mxu0 %vm142_vm0, %v47_v24 }
  0x58   :  { %560 = vmatprep.mubr.msk.f32.mxu1 %vm142_vm0, %v57_v25  ;;  %558 = vmatmul.mubr.msk.f32.vlgmr.msra.gmra.mxu0 %vm142_vm0, %v52_v26 }
  0x59   :  { %561 = vmatmul.mubr.msk.f32.vlgmr.msra.gmra.mxu1 %vm142_vm0, %v62_v27 }
 0x100   :  { %v473_v28 = vpop.f32.mrf.mxu0 }
 0x101   :  { %v517_v29 = vpop.f32.mrf.mxu1 }
 0x102   :  { %v474_v30 = vpop.f32.mrf.mxu0 }
 0x103   :  { %v518_v31 = vpop.f32.mrf.mxu1  ;;  %v475_v41 = vadd.f32 %v474_v30, %v473_v28 }
 0x104   :  { %v519_v53 = vadd.f32 %v518_v31, %v517_v29 }
 0x105   :  { %v222_v49 = vadd.f32 %v475_v41, %v436_v43 }
 0x106   :  { %v476_v32 = vpop.f32.mrf.mxu0 }
 0x107   :  { %v520_v33 = vpop.f32.mrf.mxu1  ;;  %v307_v62 = vadd.f32 %v519_v53, %v222_v49 }
 0x108   :  { %v477_v34 = vpop.f32.mrf.mxu0 }
 0x109   :  { %v521_v35 = vpop.f32.mrf.mxu1  ;;  %v478_v40 = vadd.f32 %v477_v34, %v476_v32 }
 0x10a   :  { %v522_v50 = vadd.f32 %v521_v35, %v520_v33 }
 0x10b   :  { %v227_v46 = vadd.f32 %v478_v40, %v436_v43 }
 0x10c   :  { %v479_v36 = vpop.f32.mrf.mxu0 }
 0x10d   :  { %v523_v37 = vpop.f32.mrf.mxu1  ;;  %v312_v57 = vadd.f32 %v522_v50, %v227_v46 }
 0x10e   :  { %v480_v38 = vpop.f32.mrf.mxu0 }
 0x10f   :  { %v524_v39 = vpop.f32.mrf.mxu1  ;;  %v481_v42 = vadd.f32 %v480_v38, %v479_v36 }
 0x110   :  { %v525_v54 = vadd.f32 %v524_v39, %v523_v37 }
 0x111   :  { %v232_v51 = vadd.f32 %v481_v42, %v436_v43 }
 0x112   :  { %v482_v44 = vpop.f32.mrf.mxu0 }
 0x113   :  { %v526_v45 = vpop.f32.mrf.mxu1  ;;  %v317_v63 = vadd.f32 %v525_v54, %v232_v51 }
 0x114   :  { %v483_v47 = vpop.f32.mrf.mxu0 }
 0x115   :  { %v527_v48 = vpop.f32.mrf.mxu1  ;;  %v484_v52 = vadd.f32 %v483_v47, %v482_v44 }
 0x116   :  { %v528_v56 = vadd.f32 %v527_v48, %v526_v45 }
 0x117   :  { %v237_v55 = vadd.f32 %v484_v52, %v436_v43 }
 0x118   :  { %v559_v58 = vpop.f32.mrf.mxu0 }
 0x119   :  { %v562_v59 = vpop.f32.mrf.mxu1  ;;  %v397_v60 = vadd.f32 %v559_v58, %v312_v57  ;;  %v322_v61 = vadd.f32 %v528_v56, %v237_v55 }
 0x11a   :  { %v391_v0 = vpop.f32.mrf.mxu0 }
 0x11b   :  { %v401_v1 = vpop.f32.mrf.mxu1  ;;  %v411_v2 = vmax.f32 %v397_v60, 0.0  ;;  %v407_v3 = vadd.f32 %v562_v59, %v322_v61  ;;  %v392_v4 = vadd.f32 %v391_v0, %v307_v62 }
 0x11c   :  { %v402_v5 = vadd.f32 %v401_v1, %v317_v63 }
 0x11d   :  { %415 = vst [vmem:[#allocation7 + $0x8] sm:$0xff] %v411_v2  ;;  %v413_v6 = vmax.f32 %v407_v3, 0.0  ;;  %v410_v7 = vmax.f32 %v392_v4, 0.0 }
 0x11e   :  { %v412_v8 = vmax.f32 %v402_v5, 0.0 }
 0x11f   :  { %417 = vst [vmem:[#allocation7 + $0x18] sm:$0xff] %v413_v6  ;;  %414 = vst [vmem:[#allocation7] sm:$0xff] %v410_v7 }
 0x120   :  { %416 = vst [vmem:[#allocation7 + $0x10] sm:$0xff] %v412_v8 }
 0x121   :  { %637 = shalt.err (!%p634_p0)
}
 0x122   :  { %429 = dma.vmem_to_hbm [thread:$0]  %s424_s26, 512, %s700_s3, [#allocation4], %s656_s22, %s656_s22, %s657_s23  }
 0x123   :  { %650 = dma.done.wait [#allocation4], 512  }
 0x124   :  { %651 = vsyncadd [#allocation4], 4294966784 }
 0x125   :  { %433 = vsyncpa [#allocation3], 1 }
 0x126   :  { %434 = vsyncpa [#allocation6], 1 }
 0x127   :  { %435 = vsyncpa [#allocation4], 1 }

</bundles_post_ra>
